<compile_context>
chip_gen: v5e
topology: v5e:2x2
jax: 0.10.0
libtpu: 0.0.40
codegen_flags: <defaults>
</compile_context>

<pallas_src>
import jax
import jax.numpy as jnp
from jax import lax
from jax.experimental import pallas as pl
from jax.experimental.pallas import tpu as pltpu

K = 7          # SpatialAttention kernel_size
P = 3          # padding (kernel_size == 7 -> padding 3)

_LANE = 128
# Dense-Toeplitz weight budget (bf16): 2 * HWp^2 * 2 bytes; 1408 lanes ~ 7.6 MiB,
# leaving room for >= 4 MiB x blocks inside v7x's 64 MiB physical VMEM.
_MAX_DENSE_HW = 1408


def _round_up(v, m):
    return ((v + m - 1) // m) * m


def pack_conv_weight(weight, H, W, *, dtype=jnp.bfloat16):
    """One-time weight preprocessing (do this at weight-load time and cache it).

    weight: (1, 2, K, K) conv1.weight (bias=False).
    Returns T of shape (2*HWp, HWp) in `dtype`, HWp = H*W rounded up to 128 lanes,
    such that for planes = [avg | max] flattened + lane-padded to (N, 2*HWp):
        conv_flat_padded = planes @ T
    Zero padding of the conv, the 7x7 band structure, the cross-channel sum and the
    lane padding are all folded into T.
    """
    HW = H * W
    HWp = _round_up(max(HW, _LANE), _LANE)
    if HWp > _MAX_DENSE_HW:
        raise ValueError(
            f"dense Toeplitz path only supports padded H*W <= {_MAX_DENSE_HW} "
            f"(got H*W={HW}); a row-factored conv form is required for larger planes")

    wk = weight.astype(jnp.float32).reshape(2, K, K)
    dy = jnp.arange(H)[:, None] - jnp.arange(H)[None, :] + P      # ky = hi - h + P
    dx = jnp.arange(W)[:, None] - jnp.arange(W)[None, :] + P      # kx = wi - w + P
    vy = (dy >= 0) & (dy < K)
    vx = (dx >= 0) & (dx < K)
    t = wk[:, jnp.clip(dy, 0, K - 1)[:, None, :, None],
              jnp.clip(dx, 0, K - 1)[None, :, None, :]]            # (2, H, W, H, W)
    mask = (vy[:, None, :, None] & vx[None, :, None, :])[None]     # (1, H, W, H, W)
    t = jnp.where(mask, t, 0.0).reshape(2, HW, HW)
    t = jnp.pad(t, ((0, 0), (0, HWp - HW), (0, HWp - HW)))         # zero rows/cols for lane pad
    # Fuse the two input channels along the contraction axis:
    # rows [0, HWp) = avg-plane taps, rows [HWp, 2*HWp) = max-plane taps.
    return t.reshape(2 * HWp, HWp).astype(dtype)


def _spatial_attention_kernel(wmat_ref, x_ref, o_ref):
    # wmat_ref: whole-array VMEM bf16[2*HWp, HWp]  (Toeplitz-packed conv1 weight)
    # x_ref / o_ref: VMEM (NB, C, HWp) blocks in the input dtype, lane-dense.
    x = x_ref[...]                                                 # stays in input dtype
    inv_c = 1.0 / x.shape[1]

    # Channel-wise mean / max over the (small) sublane axis; f32 accumulation for the
    # mean only -- the resulting planes are just (NB, HWp).
    avg = jnp.sum(x, axis=1, dtype=jnp.float32) * inv_c            # (NB, HWp) f32
    mx = jnp.max(x, axis=1).astype(jnp.float32)                    # (NB, HWp) f32

    # Single fused MXU matmul: [avg | max] @ T, bf16 operands, f32 accumulation.
    planes = jnp.concatenate([avg, mx], axis=-1).astype(wmat_ref.dtype)   # (NB, 2*HWp)
    conv = jnp.dot(planes, wmat_ref[...], preferred_element_type=jnp.float32)

    # Numerically stable sigmoid on the EUP (no exp-overflow -> NaN path).
    gate = 0.5 + 0.5 * jnp.tanh(0.5 * conv)                        # (NB, HWp) f32

    # Gate the residual input in the input dtype; lane-dense (unmasked) store.
    o_ref[...] = x * gate.astype(x.dtype)[:, None, :]


def _choose_batch_tile(N, per_sample_bytes, *, target_block_bytes=4 << 20, min_steps=4):
    """Largest NB dividing N that keeps >= min(min_steps, N) grid steps and blocks
    within ~target_block_bytes, so DMA/compute/writeback pipeline and both v7x
    TensorCores get work."""
    want_steps = min(min_steps, N)
    best = 1
    for nb in range(1, N + 1):
        if N % nb:
            continue
        if N // nb < want_steps:
            continue
        if nb > 1 and nb * per_sample_bytes > target_block_bytes:
            continue
        best = nb
    return best
    # TODO(synk): if a single sample (C * HWp) already exceeds the block budget,
    # tile the channel axis as well instead of falling back to NB = 1.


def spatial_attention(x, wmat, *, batch_tile=None):
    """SpatialAttention forward: sigmoid(conv7x7([mean_c(x), max_c(x)])) * x.

    x: (N, C, H, W);  wmat: (2*HWp, HWp) packed weight from pack_conv_weight.
    """
    N, C, H, W = x.shape
    HW = H * W
    HWp = wmat.shape[1]
    assert wmat.shape[0] == 2 * HWp and HWp >= HW and HWp % _LANE == 0

    x_flat = x.reshape(N, C, HW)                       # layout plumbing only
    if HWp != HW:
        # Keep the lane axis a multiple of 128 so loads/stores stay unmasked.
        x_flat = jnp.pad(x_flat, ((0, 0), (0, 0), (0, HWp - HW)))

    itemsize = jnp.dtype(x.dtype).itemsize
    per_sample_bytes = C * HWp * itemsize
    NB = _choose_batch_tile(N, per_sample_bytes) if batch_tile is None else batch_tile
    assert N % NB == 0, "batch_tile must divide N"

    block_bytes = NB * per_sample_bytes
    weight_bytes = wmat.size * jnp.dtype(wmat.dtype).itemsize
    # single weight copy + double-buffered in & out blocks + compiler scratch margin
    vmem_needed = weight_bytes + 4 * block_bytes + (8 << 20)
    vmem_limit = int(min(max(vmem_needed, 32 << 20), 64 << 20))    # v7x physical = 64 MiB

    out_flat = pl.pallas_call(
        _spatial_attention_kernel,
        out_shape=jax.ShapeDtypeStruct((N, C, HWp), x.dtype),
        grid=(N // NB,),
        in_specs=[
            # Constant weight: whole array resident in VMEM once, no double buffer.
            pl.BlockSpec(memory_space=pltpu.MemorySpace.VMEM),
            pl.BlockSpec((NB, C, HWp), lambda b: (b, 0, 0)),
        ],
        out_specs=pl.BlockSpec((NB, C, HWp), lambda b: (b, 0, 0)),
        compiler_params=pltpu.CompilerParams(
            dimension_semantics=("parallel",),          # batch steps are independent
            vmem_limit_bytes=vmem_limit),
    )(wmat, x_flat)

    if HWp != HW:
        out_flat = out_flat[:, :, :HW]
    return out_flat.reshape(N, C, H, W)


def _reference(x, weight):
    # Pure-JAX reference mirroring the PyTorch SpatialAttention.forward.
    avg = jnp.mean(x, axis=1, keepdims=True)
    mx = jnp.max(x, axis=1, keepdims=True)
    cat = jnp.concatenate([avg, mx], axis=1)                       # (N, 2, H, W)
    conv = lax.conv_general_dilated(
        cat, weight.astype(jnp.float32), window_strides=(1, 1),
        padding=((P, P), (P, P)),
        dimension_numbers=("NCHW", "OIHW", "NCHW"),
        precision=lax.Precision.HIGHEST)
    return jax.nn.sigmoid(conv) * x


if __name__ == "__main__":
    key = jax.random.PRNGKey(0)
    kx, kw, kx2 = jax.random.split(key, 3)

    # conv1 weight (out=1, in=2, 7, 7), bias=False -- deterministic kaiming-ish init.
    fan_in = 2 * K * K
    weight = jax.random.normal(kw, (1, 2, K, K), dtype=jnp.float32) * (2.0 / fan_in) ** 0.5

    # --- case 1: H*W already a multiple of 128 lanes ---
    N, C, H, W = 2, 4, 16, 16
    x = jax.random.normal(kx, (N, C, H, W), dtype=jnp.float32)
    wmat = pack_conv_weight(weight, H, W)              # packed once per weight
    out = jax.block_until_ready(spatial_attention(x, wmat))
    ref = _reference(x, weight)
    assert out.shape == (N, C, H, W)
    # bf16 MXU operands (f32 accumulation) vs HIGHEST-precision f32 reference.
    assert jnp.allclose(out, ref, atol=2e-2, rtol=2e-2), "mismatch vs JAX reference (16x16)"

    # --- case 2: H*W not a multiple of 128 (exercises the lane-padding path) ---
    N2, C2, H2, W2 = 2, 4, 12, 12
    x2 = jax.random.normal(kx2, (N2, C2, H2, W2), dtype=jnp.float32)
    wmat2 = pack_conv_weight(weight, H2, W2)
    out2 = jax.block_until_ready(spatial_attention(x2, wmat2))
    ref2 = _reference(x2, weight)
    assert out2.shape == (N2, C2, H2, W2)
    assert jnp.allclose(out2, ref2, atol=2e-2, rtol=2e-2), "mismatch vs JAX reference (12x12)"

    print("KERNEL_OK")
</pallas_src>

<mosaic_0001>
module attributes {stable_mosaic.version = 11 : i64} {
  func.func @_spatial_attention_kernel(%arg0: i32, %arg1: memref<512x256xbf16, #tpu.memory_space<vmem>>, %arg2: memref<1x4x256xf32, #tpu.memory_space<vmem>>, %arg3: memref<1x4x256xf32, #tpu.memory_space<vmem>>) attributes {dimension_semantics = [#tpu.dimension_semantics<parallel>], iteration_bounds = array<i64: 2>, scalar_prefetch = 0 : i64, scratch_operands = 0 : i64, tpu.core_type = #tpu.core_type<tc>, window_params = [{pipeline_mode = #tpu.pipeline_mode<synchronous>, transform_indices = @transform_0, window_bounds = array<i64: 512, 256>}, {transform_indices = @transform_1, window_bounds = array<i64: 1, 4, 256>}, {transform_indices = @transform_2, window_bounds = array<i64: 1, 4, 256>}]} {
    %c0 = arith.constant 0 : index
    %c0_0 = arith.constant 0 : index
    %c0_1 = arith.constant 0 : index
    %0 = vector.load %arg2[%c0, %c0_0, %c0_1] : memref<1x4x256xf32, #tpu.memory_space<vmem>>, vector<1x4x256xf32>
    %cst = arith.constant dense<0.000000e+00> : vector<1x256xf32>
    %1 = vector.multi_reduction <add>, %0, %cst [1] : vector<1x4x256xf32> to vector<1x256xf32>
    %cst_2 = arith.constant 2.500000e-01 : f32
    %2 = vector.broadcast %cst_2 : f32 to vector<1x256xf32>
    %3 = arith.mulf %1, %2 : vector<1x256xf32>
    %cst_3 = arith.constant dense<0xFF800000> : vector<1x256xf32>
    %4 = vector.multi_reduction <maximumf>, %0, %cst_3 [1] : vector<1x4x256xf32> to vector<1x256xf32>
    %5 = tpu.concatenate %3, %4 in 1 : vector<1x256xf32>, vector<1x256xf32> -> vector<1x512xf32>
    %6 = arith.truncf %5 : vector<1x512xf32> to vector<1x512xbf16>
    %c0_4 = arith.constant 0 : index
    %c0_5 = arith.constant 0 : index
    %7 = vector.load %arg1[%c0_4, %c0_5] : memref<512x256xbf16, #tpu.memory_space<vmem>>, vector<512x256xbf16>
    %cst_6 = arith.constant dense<0.000000e+00> : vector<1x256xf32>
    %8 = tpu.matmul %6, %7, %cst_6 {dimension_numbers = #tpu.dot_dimension_numbers<[1], [0], [0], [1], [0, 0, 1, 1], [], []>} : vector<1x512xbf16>, vector<512x256xbf16>, vector<1x256xf32> -> vector<1x256xf32>
    %cst_7 = arith.constant 5.000000e-01 : f32
    %9 = vector.broadcast %cst_7 : f32 to vector<1x256xf32>
    %10 = arith.mulf %9, %8 : vector<1x256xf32>
    %11 = math.tanh %10 : vector<1x256xf32>
    %cst_8 = arith.constant 5.000000e-01 : f32
    %12 = vector.broadcast %cst_8 : f32 to vector<1x256xf32>
    %13 = arith.mulf %12, %11 : vector<1x256xf32>
    %cst_9 = arith.constant 5.000000e-01 : f32
    %14 = vector.broadcast %cst_9 : f32 to vector<1x256xf32>
    %15 = arith.addf %14, %13 : vector<1x256xf32>
    %16 = vector.shape_cast %15 : vector<1x256xf32> to vector<1x1x256xf32>
    %17 = vector.broadcast %16 : vector<1x1x256xf32> to vector<1x4x256xf32>
    %18 = arith.mulf %0, %17 : vector<1x4x256xf32>
    %c0_10 = arith.constant 0 : index
    %c0_11 = arith.constant 0 : index
    %c0_12 = arith.constant 0 : index
    %19 = vector.load %arg3[%c0_10, %c0_11, %c0_12] : memref<1x4x256xf32, #tpu.memory_space<vmem>>, vector<1x4x256xf32>
    tpu.vector_store %arg3[%c0_10, %c0_11, %c0_12], %18 {strides = array<i32>} : memref<1x4x256xf32, #tpu.memory_space<vmem>>, vector<1x4x256xf32>,
    return
  }
  func.func @transform_0(%arg0: i32) -> (i32, i32) {
    %c0_i32 = arith.constant 0 : i32
    %c0_i32_0 = arith.constant 0 : i32
    %c0_i32_1 = arith.constant 0 : i32
    return %c0_i32, %c0_i32_0 : i32, i32
  }
  func.func @transform_1(%arg0: i32) -> (i32, i32, i32) {
    %c0_i32 = arith.constant 0 : i32
    %c0_i32_0 = arith.constant 0 : i32
    %c0_i32_1 = arith.constant 0 : i32
    return %arg0, %c0_i32, %c0_i32_0 : i32, i32, i32
  }
  func.func @transform_2(%arg0: i32) -> (i32, i32, i32) {
    %c0_i32 = arith.constant 0 : i32
    %c0_i32_0 = arith.constant 0 : i32
    %c0_i32_1 = arith.constant 0 : i32
    return %arg0, %c0_i32, %c0_i32_0 : i32, i32, i32
  }
}

</mosaic_0001>

<bundles_post_ra>
// kernel: tpu_custom_call.1
= control target key start
LH: loop header
LB: loop body
LE: loop exit
PB: predicated region body
PF: predicated region fallthrough
CT: control target
= control target key end

     0   :  { %7 = vsyncpa [#allocation3], 0  ;;  %s1534_s0 = inlined_call_operand.hbm [shape: bf16[512,256], index: 0, kind: input, shape index: {}]   ;;  %s1535_s1 = inlined_call_operand.hbm [shape: f32[2,4,256], index: 1, kind: input, shape index: {}]   ;;  %s1536_s2 = inlined_call_operand.hbm [shape: f32[2,4,256], index: 2, kind: output, shape index: {}]  }
   0x1   :  { %8 = vsyncpa [#allocation6], 0 }
   0x2   :  { %10 = vsyncpa [#allocation6 + $0x1], 0 }
   0x3   :  { %11 = vsyncpa [#allocation4], 0 }
   0x4   :  { %13 = vsyncpa [#allocation4 + $0x1], 0  ;;  %s1381_s9 = smov 0   ;;  %s1383_s10 = smov 0  }
   0x5   :  { %s1385_s11 = smov 0   ;;  %s1387_s12 = smov 0  }
   0x6 LB: > { %s108_s15 = sshll.u32 %s1534_s0, 4  ;;  %s1405_s16 = sadd.s32 4294967295, %s1361_s12   ;;  %s1361_s12 = sphi %s1387_s12, %s1546_s12   ;;  %s1357_s11 = sphi %s1385_s11, %s1545_s11   ;;  %s1353_s10 = sphi %s1383_s10, %s1544_s10   ;;  %s1349_s9 = sphi %s1381_s9, %s1543_s9   ;;  %s109_s15 = int_to_ptr.hbm [resolvable:$true] %s108_s15 }
   0x7   : > { %p831_p0 = scmp.ge.s32.totalorder %s1361_s12, 1  ;;  %p61_p1 = scmp.eq.s32.totalorder %s1405_s16, 0 }
   0x8   : > { %p97_p2 = scmp.lt.s32.totalorder %s1361_s12, 3  ;;  %s1363_s18 = smov [#allocation2]  }
   0x9   : > { %s110_s19 = sshll.u32 %s1363_s18, 4  ;;  %s1364_s20 = smov 128   ;;  %s111_s19 = int_to_ptr.vmem [resolvable:$true] %s110_s19 }
   0xa   : > { %p1410_p3 = pnand %p831_p0, %p97_p2  ;;  %s1365_s21 = smov 8  }
   0xb   : > { %s830_s22 = sadd.s32 4294967294, %s1361_s12   ;;  %s1421_s23 = sadd.s32 1, %s1361_s12  }
   0xc   : > { %p1176_p4 = pneg %p1410_p3  ;;  %s47_s24 = sadd.s32 1, %s1357_s11 }
   0xd   : > { %s44_s25 = ssub.s32 %s1361_s12, %s1421_s23  ;;  %p54_p7 = scmp.ne.s32.totalorder %s1357_s11, %s1353_s10 }
   0xe   : > { %p1177_p6 = pnand %p1176_p4, %p61_p1  ;;  %p45_p8 = scmp.eq.s32.totalorder %s44_s25, 0 }
   0xf   : > { %p55_p9 = scmp.eq.s32.totalorder %s1361_s12, 0  ;;  %p60_p10 = scmp.ne.s32.totalorder %s1353_s10, %s1349_s9 }
  0x10   : > { %1179 = dma.hbm_to_vmem [thread:$0]  (!%p1177_p6), %s109_s15, 8192, %s111_s19, [#allocation3], %s1364_s20, %s1364_s20, %s1365_s21  }
  0x11   : > { %p84_p11 = scmp.eq.s32.totalorder %s1405_s16, 1  ;;  %p1437_p12 = por %p61_p1, %p60_p10 }
  0x12   : > { %s1433_s26 = scalar_select %p45_p8, %s1357_s11, %s47_s24  }
  0x13   : > { %p1441_p13 = por %p84_p11, %p54_p7  ;;  %p90_p0 = scmp.eq.s32.totalorder %s830_s22, 1 }
  0x14   : > { %p56_p2 = por %p55_p9, %p54_p7  ;;  %s124_s29 = sand.u32 1, %s1357_s11  }
  0x15   : > { %p1446_p4 = por %p90_p0, %p60_p10  ;;  %p1189_p6 = scmp.lt.s32.totalorder %s1361_s12, 2 }
  0x16   : > { %s834_s3 = sshll.u32 %s124_s29, 3  ;;  %s1102_s4 = sshll.u32 %s1361_s12, 3 }
  0x17   : > { %s133_s7 = scalar_lea.hbm %s1535_s1, %s1102_s4  ;;  %s128_s13 = scalar_lea.vmem [#allocation5], %s834_s3 }
  0x18   : > { %s135_s8 = sshll.u32 %s133_s7, 4  ;;  %s137_s14 = sshll.u32 %s128_s13, 4  ;;  %s136_s8 = int_to_ptr.hbm [resolvable:$true] %s135_s8  ;;  %s138_s14 = int_to_ptr.vmem [resolvable:$true] %s137_s14 }
  0x19   : > { %p1455_p8 = pnand %p1189_p6, %p56_p2  ;;  %s125_s18 = scalar_lea.sflag [#allocation6], %s124_s29 }
  0x1a   : > { %s1261_s19 = sshra.s32 %s136_s8, 4  ;;  %s1268_s24 = scalar_lea.hbm %s1535_s1, 16  ;;  %s1262_s19 = int_to_ptr.hbm [resolvable:$true] %s1261_s19 }
  0x1b   : > { %s1263_s20 = scalar_lea.hbm %s1262_s19, 8  ;;  %p1265_p9 = pneg %p1455_p8 }
  0x1c   : > { %p1264_p7 = scmp.ne.s32.totalorder %s1262_s19, %s1263_s20  ;;  %p1269_p0 = scmp.lt.s32.totalorder %s1262_s19, %s1535_s1 }
  0x1d   : > { %p1270_p2 = scmp.lt.s32.totalorder %s1268_s24, %s1263_s20 }
  0x1e   : > { %p1266_p10 = pnand %p1265_p9, %p1264_p7 }
  0x1f   : > { %p1271_p6 = por %p1270_p2, %p1269_p0 }
  0x20   : > { %p1267_p11 = pneg %p1266_p10 }
  0x22   : > { %p1272_p5 = pnand %p1271_p6, %p1267_p11 }
  0x24   : > { %1275 = shalt.err (!%p1272_p5)
}
  0x25   : > { %1183 = dma.hbm_to_vmem [thread:$0]  (!%p1455_p8), %s136_s8, 128, %s138_s14, %s125_s18  }
  0x26   : > { %146 = sbr.rel (%p1410_p3) target bundleno = 278 (0x116), region = 28 }
  0x2b   : > { %1336 = dma.done.wait (%p61_p1), [#allocation3], 8192  }
  0x2c   : > { %1338 = vsyncadd (%p61_p1), [#allocation3], 4294959104  ;;  %s1476_s29 = sand.u32 1, %s1353_s10  }
  0x2d   : > { %s839_s4 = sshll.u32 %s1476_s29, 3  ;;  %s154_s5 = scalar_lea.sflag [#allocation6], %s1476_s29 }
  0x2e   : > { %s1482_s6 = scalar_lea.vmem [#allocation5], %s839_s4 }
  0x2f   : > { %1340 = dma.done.wait (%p1437_p12), %s154_s5, 128  }
  0x30   : > { %1342 = vsyncadd (%p1437_p12), %s154_s5, 4294967168  ;;  %v899_v0 = vld [vmem:[#allocation2 + $0x70] sm:$0xf]  ;;  %v1118_v1 = vld [vmem:[#allocation2 + $0x74] sm:$0xf0]  ;;  %vm186_vm0 = vcmask 1043456  }
  0x31   : > { %v963_v2 = vld [vmem:[#allocation2 + $0xf0] sm:$0xf]  ;;  %v900_v3 = vor.u32 %v1118_v1, %v899_v0  ;;  %v1134_v4 = vld [vmem:[#allocation2 + $0xf4] sm:$0xf0]  ;;  %v891_v11 = vld [vmem:[#allocation2 + $0x60] sm:$0xf] }
  0x32   : > { %v1027_v5 = vld [vmem:[#allocation2 + $0x170] sm:$0xf]  ;;  %v1150_v6 = vld [vmem:[#allocation2 + $0x174] sm:$0xf0]  ;;  %v964_v7 = vor.u32 %v1134_v4, %v963_v2  ;;  %v1116_v13 = vld [vmem:[#allocation2 + $0x64] sm:$0xf0] }
  0x33   : > { %v1028_v8 = vor.u32 %v1150_v6, %v1027_v5  ;;  %v1091_v9 = vld [vmem:[#allocation2 + $0x1f0] sm:$0xf]  ;;  %v1166_v10 = vld [vmem:[#allocation2 + $0x1f4] sm:$0xf0]  ;;  %610 = vmatpush.bf16.msra.mxu0 %v900_v3  ;;  %v955_v14 = vld [vmem:[#allocation2 + $0xe0] sm:$0xf]  ;;  %v892_v16 = vor.u32 %v1116_v13, %v891_v11 }
  0x34   : > { %v1092_v12 = vor.u32 %v1166_v10, %v1091_v9  ;;  %v1132_v15 = vld [vmem:[#allocation2 + $0xe4] sm:$0xf0]  ;;  %623 = vmatpush.bf16.msra.mxu1 %v964_v7  ;;  %v1019_v18 = vld [vmem:[#allocation2 + $0x160] sm:$0xf]  ;;  %v883_v23 = vld [vmem:[#allocation2 + $0x50] sm:$0xf] }
  0x35   : > { %636 = vmatpush.bf16.msra.mxu2 %v1028_v8  ;;  %v956_v17 = vor.u32 %v1132_v15, %v955_v14  ;;  %v1148_v19 = vld [vmem:[#allocation2 + $0x164] sm:$0xf0]  ;;  %v1083_v20 = vld [vmem:[#allocation2 + $0x1e0] sm:$0xf]  ;;  %v1114_v24 = vld [vmem:[#allocation2 + $0x54] sm:$0xf0] }
  0x36   : > { %649 = vmatpush.bf16.msra.mxu3 %v1092_v12  ;;  %v1020_v21 = vor.u32 %v1148_v19, %v1019_v18  ;;  %v1164_v22 = vld [vmem:[#allocation2 + $0x1e4] sm:$0xf0]  ;;  %v947_v26 = vld [vmem:[#allocation2 + $0xd0] sm:$0xf]  ;;  %v1130_v27 = vld [vmem:[#allocation2 + $0xd4] sm:$0xf0]  ;;  %v884_v29 = vor.u32 %v1114_v24, %v883_v23 }
  0x37   : > { %v1084_v25 = vor.u32 %v1164_v22, %v1083_v20  ;;  %v1011_v28 = vld [vmem:[#allocation2 + $0x150] sm:$0xf]  ;;  %611 = vmatpush.bf16.msra.mxu0 %v892_v16  ;;  %v1146_v30 = vld [vmem:[#allocation2 + $0x154] sm:$0xf0]  ;;  %v948_v33 = vor.u32 %v1130_v27, %v947_v26  ;;  %v875_v35 = vld [vmem:[#allocation2 + $0x40] sm:$0xf] }
  0x38   : > { %v1075_v31 = vld [vmem:[#allocation2 + $0x1d0] sm:$0xf]  ;;  %v1162_v32 = vld [vmem:[#allocation2 + $0x1d4] sm:$0xf0]  ;;  %624 = vmatpush.bf16.msra.mxu1 %v956_v17  ;;  %v1012_v34 = vor.u32 %v1146_v30, %v1011_v28  ;;  %v1112_v36 = vld [vmem:[#allocation2 + $0x44] sm:$0xf0] }
  0x39   : > { %637 = vmatpush.bf16.msra.mxu2 %v1020_v21  ;;  %v939_v37 = vld [vmem:[#allocation2 + $0xc0] sm:$0xf]  ;;  %v1076_v38 = vor.u32 %v1162_v32, %v1075_v31  ;;  %v1128_v39 = vld [vmem:[#allocation2 + $0xc4] sm:$0xf0]  ;;  %v876_v44 = vor.u32 %v1112_v36, %v875_v35  ;;  %v867_v47 = vld [vmem:[#allocation2 + $0x30] sm:$0xf] }
  0x3a   : > { %650 = vmatpush.bf16.msra.mxu3 %v1084_v25  ;;  %v1003_v40 = vld [vmem:[#allocation2 + $0x140] sm:$0xf]  ;;  %v1144_v41 = vld [vmem:[#allocation2 + $0x144] sm:$0xf0]  ;;  %v940_v45 = vor.u32 %v1128_v39, %v939_v37  ;;  %v1110_v48 = vld [vmem:[#allocation2 + $0x34] sm:$0xf0] }
  0x3b   : > { %v1067_v42 = vld [vmem:[#allocation2 + $0x1c0] sm:$0xf]  ;;  %v1160_v43 = vld [vmem:[#allocation2 + $0x1c4] sm:$0xf0]  ;;  %612 = vmatpush.bf16.msra.mxu0 %v884_v29  ;;  %v1004_v46 = vor.u32 %v1144_v41, %v1003_v40  ;;  %v931_v49 = vld [vmem:[#allocation2 + $0xb0] sm:$0xf]  ;;  %v868_v56 = vor.u32 %v1110_v48, %v867_v47 }
  0x3c   : > { %625 = vmatpush.bf16.msra.mxu1 %v948_v33  ;;  %v1068_v50 = vor.u32 %v1160_v43, %v1067_v42  ;;  %v1126_v51 = vld [vmem:[#allocation2 + $0xb4] sm:$0xf0]  ;;  %v995_v52 = vld [vmem:[#allocation2 + $0x130] sm:$0xf]  ;;  %v859_v59 = vld [vmem:[#allocation2 + $0x20] sm:$0xf] }
  0x3d   : > { %638 = vmatpush.bf16.msra.mxu2 %v1012_v34  ;;  %v1142_v53 = vld [vmem:[#allocation2 + $0x134] sm:$0xf0]  ;;  %v1059_v54 = vld [vmem:[#allocation2 + $0x1b0] sm:$0xf]  ;;  %v932_v57 = vor.u32 %v1126_v51, %v931_v49  ;;  %v1108_v60 = vld [vmem:[#allocation2 + $0x24] sm:$0xf0] }
  0x3e   : > { %651 = vmatpush.bf16.msra.mxu3 %v1076_v38  ;;  %v1158_v55 = vld [vmem:[#allocation2 + $0x1b4] sm:$0xf0]  ;;  %v996_v58 = vor.u32 %v1142_v53, %v995_v52  ;;  %v923_v61 = vld [vmem:[#allocation2 + $0xa0] sm:$0xf]  ;;  %v1124_v63 = vld [vmem:[#allocation2 + $0xa4] sm:$0xf0]  ;;  %v860_v4 = vor.u32 %v1108_v60, %v859_v59 }
  0x3f   : > { %613 = vmatpush.bf16.msra.mxu0 %v876_v44  ;;  %v1060_v62 = vor.u32 %v1158_v55, %v1059_v54  ;;  %v987_v0 = vld [vmem:[#allocation2 + $0x120] sm:$0xf]  ;;  %v1140_v1 = vld [vmem:[#allocation2 + $0x124] sm:$0xf0]  ;;  %v924_v5 = vor.u32 %v1124_v63, %v923_v61  ;;  %v851_v7 = vld [vmem:[#allocation2 + $0x10] sm:$0xf] }
  0x40   : > { %626 = vmatpush.bf16.msra.mxu1 %v940_v45  ;;  %v1051_v2 = vld [vmem:[#allocation2 + $0x1a0] sm:$0xf]  ;;  %v1156_v3 = vld [vmem:[#allocation2 + $0x1a4] sm:$0xf0]  ;;  %v988_v6 = vor.u32 %v1140_v1, %v987_v0  ;;  %v1106_v8 = vld [vmem:[#allocation2 + $0x14] sm:$0xf0] }
  0x41   : > { %639 = vmatpush.bf16.msra.mxu2 %v1004_v46  ;;  %v915_v9 = vld [vmem:[#allocation2 + $0x90] sm:$0xf]  ;;  %v1052_v10 = vor.u32 %v1156_v3, %v1051_v2  ;;  %v1122_v11 = vld [vmem:[#allocation2 + $0x94] sm:$0xf0]  ;;  %v843_v16 = vld [vmem:[#allocation2] sm:$0xf]  ;;  %v852_v17 = vor.u32 %v1106_v8, %v851_v7 }
  0x42   : > { %652 = vmatpush.bf16.msra.mxu3 %v1068_v50  ;;  %v979_v12 = vld [vmem:[#allocation2 + $0x110] sm:$0xf]  ;;  %v1138_v13 = vld [vmem:[#allocation2 + $0x114] sm:$0xf0]  ;;  %v1104_v18 = vld [vmem:[#allocation2 + $0x4] sm:$0xf0]  ;;  %v916_v21 = vor.u32 %v1122_v11, %v915_v9 }
  0x43   : > { %614 = vmatpush.bf16.msra.mxu0 %v868_v56  ;;  %v1043_v14 = vld [vmem:[#allocation2 + $0x190] sm:$0xf]  ;;  %v1154_v15 = vld [vmem:[#allocation2 + $0x194] sm:$0xf0]  ;;  %v907_v19 = vld [vmem:[#allocation2 + $0x80] sm:$0xf]  ;;  %v980_v22 = vor.u32 %v1138_v13, %v979_v12  ;;  %v844_v33 = vor.u32 %v1104_v18, %v843_v16 }
  0x44   : > { %627 = vmatpush.bf16.msra.mxu1 %v932_v57  ;;  %v1120_v20 = vld [vmem:[#allocation2 + $0x84] sm:$0xf0]  ;;  %v971_v23 = vld [vmem:[#allocation2 + $0x100] sm:$0xf]  ;;  %v1044_v26 = vor.u32 %v1154_v15, %v1043_v14  ;;  %v1117_v28 = vld [vmem:[#allocation2 + $0x74] sm:$0xf] }
  0x45   : > { %640 = vmatpush.bf16.msra.mxu2 %v996_v58  ;;  %v1136_v24 = vld [vmem:[#allocation2 + $0x104] sm:$0xf0]  ;;  %v1035_v25 = vld [vmem:[#allocation2 + $0x180] sm:$0xf]  ;;  %v901_v29 = vld [vmem:[#allocation2 + $0x78] sm:$0xf0]  ;;  %v908_v36 = vor.u32 %v1120_v20, %v907_v19 }
  0x46   : > { %653 = vmatpush.bf16.msra.mxu3 %v1060_v62  ;;  %v1152_v27 = vld [vmem:[#allocation2 + $0x184] sm:$0xf0]  ;;  %v1133_v30 = vld [vmem:[#allocation2 + $0xf4] sm:$0xf]  ;;  %v965_v31 = vld [vmem:[#allocation2 + $0xf8] sm:$0xf0]  ;;  %v972_v37 = vor.u32 %v1136_v24, %v971_v23  ;;  %v904_v41 = vor.u32 %v1117_v28, %v901_v29 }
  0x47   : > { %615 = vmatpush.bf16.msra.mxu0 %v860_v4  ;;  %v1489_v32 = vld [vmem:[%s1482_s6] sm:$0xff]  ;;  %v1149_v34 = vld [vmem:[#allocation2 + $0x174] sm:$0xf]  ;;  %v1029_v35 = vld [vmem:[#allocation2 + $0x178] sm:$0xf0]  ;;  %v1036_v40 = vor.u32 %v1152_v27, %v1035_v25  ;;  %v968_v44 = vor.u32 %v1133_v30, %v965_v31  ;;  %s1167_s17 = sshll.u32 %s1405_s16, 3 }
  0x48   : > { %628 = vmatpush.bf16.msra.mxu1 %v924_v5  ;;  %181 = vst [vmem:[#allocation1] ss:$2 sm:$0xff] %v1489_v32  ;;  %v1165_v38 = vld [vmem:[#allocation2 + $0x1f4] sm:$0xf]  ;;  %v1093_v39 = vld [vmem:[#allocation2 + $0x1f8] sm:$0xf0]  ;;  %v1032_v45 = vor.u32 %v1149_v34, %v1029_v35  ;;  %s743_s8 = scalar_lea.hbm %s1536_s2, %s1167_s17 }
  0x49   : > { %641 = vmatpush.bf16.msra.mxu2 %v988_v6  ;;  %v1115_v42 = vld [vmem:[#allocation2 + $0x64] sm:$0xf]  ;;  %v893_v43 = vld [vmem:[#allocation2 + $0x68] sm:$0xf0]  ;;  %v1096_v49 = vor.u32 %v1165_v38, %v1093_v39  ;;  %v1113_v53 = vld [vmem:[#allocation2 + $0x54] sm:$0xf] }
  0x4a   : > { %654 = vmatpush.bf16.msra.mxu3 %v1052_v10  ;;  %v1131_v46 = vld [vmem:[#allocation2 + $0xe4] sm:$0xf]  ;;  %v957_v47 = vld [vmem:[#allocation2 + $0xe8] sm:$0xf0]  ;;  %v885_v54 = vld [vmem:[#allocation2 + $0x58] sm:$0xf0]  ;;  %v896_v55 = vor.u32 %v1115_v42, %v893_v43 }
  0x4b   : > { %616 = vmatpush.bf16.msra.mxu0 %v852_v17  ;;  %v1147_v48 = vld [vmem:[#allocation2 + $0x164] sm:$0xf]  ;;  %v1021_v50 = vld [vmem:[#allocation2 + $0x168] sm:$0xf0]  ;;  %v1129_v56 = vld [vmem:[#allocation2 + $0xd4] sm:$0xf]  ;;  %v960_v59 = vor.u32 %v1131_v46, %v957_v47  ;;  %v888_v7 = vor.u32 %v1113_v53, %v885_v54 }
  0x4c   : > { %629 = vmatpush.bf16.msra.mxu1 %v916_v21  ;;  %v1163_v51 = vld [vmem:[#allocation2 + $0x1e4] sm:$0xf]  ;;  %v1085_v52 = vld [vmem:[#allocation2 + $0x1e8] sm:$0xf0]  ;;  %v949_v57 = vld [vmem:[#allocation2 + $0xd8] sm:$0xf0]  ;;  %v1024_v60 = vor.u32 %v1147_v48, %v1021_v50 }
  0x4d   : > { %642 = vmatpush.bf16.msra.mxu2 %v980_v22  ;;  %v1145_v58 = vld [vmem:[#allocation2 + $0x154] sm:$0xf]  ;;  %v1088_v63 = vor.u32 %v1163_v51, %v1085_v52  ;;  %v1013_v0 = vld [vmem:[#allocation2 + $0x158] sm:$0xf0]  ;;  %v952_v8 = vor.u32 %v1129_v56, %v949_v57  ;;  %v1111_v9 = vld [vmem:[#allocation2 + $0x44] sm:$0xf] }
  0x4e   : > { %655 = vmatpush.bf16.msra.mxu3 %v1044_v26  ;;  %v1161_v3 = vld [vmem:[#allocation2 + $0x1d4] sm:$0xf]  ;;  %v1077_v4 = vld [vmem:[#allocation2 + $0x1d8] sm:$0xf0]  ;;  %v1016_v10 = vor.u32 %v1145_v58, %v1013_v0  ;;  %v877_v13 = vld [vmem:[#allocation2 + $0x48] sm:$0xf0] }
  0x4f   : > { %617 = vmatpush.bf16.msra.mxu0 %v844_v33  ;;  %v182_v61 = vld.sshfl [vmem:[#allocation1] sm:$0xff pattern:$0x75316420]  ;;  %v183_v62 = vld.sshfl [vmem:[#allocation1 + $0x8] sm:$0xff pattern:$0x75316420]  ;;  %v1080_v16 = vor.u32 %v1161_v3, %v1077_v4  ;;  %v880_v24 = vor.u32 %v1111_v9, %v877_v13 }
  0x50   : > { %630 = vmatpush.bf16.msra.mxu1 %v908_v36  ;;  %203 = vst [vmem:[#allocation1] ss:$2 sm:$0xff] %v1489_v32  ;;  %v187_v1 = vsel %vm186_vm0, %v182_v61, 0.0  ;;  %v194_v2 = vsel %vm186_vm0, %v183_v62, 0.0  ;;  %v1127_v14 = vld [vmem:[#allocation2 + $0xc4] sm:$0xf] }
  0x51   : > { %643 = vmatpush.bf16.msra.mxu2 %v972_v37  ;;  %v188_v5 = vrot.slane %v187_v1, 4  ;;  %v195_v6 = vrot.slane %v194_v2, 4  ;;  %v941_v15 = vld [vmem:[#allocation2 + $0xc8] sm:$0xf0]  ;;  %v1143_v17 = vld [vmem:[#allocation2 + $0x144] sm:$0xf] }
  0x52   : > { %656 = vmatpush.bf16.msra.mxu3 %v1036_v40  ;;  %v1005_v18 = vld [vmem:[#allocation2 + $0x148] sm:$0xf0]  ;;  %v1159_v19 = vld [vmem:[#allocation2 + $0x1c4] sm:$0xf]  ;;  %v1109_v23 = vld [vmem:[#allocation2 + $0x34] sm:$0xf]  ;;  %v944_v33 = vor.u32 %v1127_v14, %v941_v15 }
  0x53   : > { %662 = vmatpush.bf16.msrb.mxu0 %v904_v41  ;;  %v189_v11 = vadd.f32 %v188_v5, %v187_v1  ;;  %v196_v12 = vadd.f32 %v195_v6, %v194_v2  ;;  %v1069_v22 = vld [vmem:[#allocation2 + $0x1c8] sm:$0xf0]  ;;  %v869_v25 = vld [vmem:[#allocation2 + $0x38] sm:$0xf0]  ;;  %v1125_v26 = vld [vmem:[#allocation2 + $0xb4] sm:$0xf]  ;;  %v1008_v37 = vor.u32 %v1143_v17, %v1005_v18 }
  0x54   : > { %675 = vmatpush.bf16.msrb.mxu1 %v968_v44  ;;  %v933_v27 = vld [vmem:[#allocation2 + $0xb8] sm:$0xf0]  ;;  %v1141_v34 = vld [vmem:[#allocation2 + $0x134] sm:$0xf]  ;;  %v1072_v38 = vor.u32 %v1159_v19, %v1069_v22  ;;  %v872_v46 = vor.u32 %v1109_v23, %v869_v25  ;;  %v1107_v48 = vld [vmem:[#allocation2 + $0x24] sm:$0xf] }
  0x55   : > { %688 = vmatpush.bf16.msrb.mxu2 %v1032_v45  ;;  %v190_v20 = vrot.slane %v189_v11, 2  ;;  %v197_v21 = vrot.slane %v196_v12, 2  ;;  %v997_v39 = vld [vmem:[#allocation2 + $0x138] sm:$0xf0]  ;;  %v1157_v40 = vld [vmem:[#allocation2 + $0x1b4] sm:$0xf]  ;;  %v936_v47 = vor.u32 %v1125_v26, %v933_v27 }
  0x56   : > { %701 = vmatpush.bf16.msrb.mxu3 %v1096_v49  ;;  %v1061_v45 = vld [vmem:[#allocation2 + $0x1b8] sm:$0xf0]  ;;  %v861_v53 = vld [vmem:[#allocation2 + $0x28] sm:$0xf0]  ;;  %v1123_v54 = vld [vmem:[#allocation2 + $0xa4] sm:$0xf]  ;;  %v1000_v56 = vor.u32 %v1141_v34, %v997_v39 }
  0x57   : > { %663 = vmatpush.bf16.msrb.mxu0 %v896_v55  ;;  %v204_v28 = vld.sshfl [vmem:[#allocation1] sm:$0xff pattern:$0x75316420]  ;;  %v205_v29 = vld.sshfl [vmem:[#allocation1 + $0x8] sm:$0xff pattern:$0x75316420]  ;;  %v191_v30 = vadd.f32 %v190_v20, %v189_v11  ;;  %v198_v31 = vadd.f32 %v197_v21, %v196_v12  ;;  %v1064_v57 = vor.u32 %v1157_v40, %v1061_v45  ;;  %v864_v2 = vor.u32 %v1107_v48, %v861_v53 }
  0x58   : > { %676 = vmatpush.bf16.msrb.mxu1 %v960_v59  ;;  %v208_v35 = vsel %vm186_vm0, %v204_v28, -inf  ;;  %v215_v36 = vsel %vm186_vm0, %v205_v29, -inf  ;;  %v925_v55 = vld [vmem:[#allocation2 + $0xa8] sm:$0xf0]  ;;  %v1139_v58 = vld [vmem:[#allocation2 + $0x124] sm:$0xf] }
  0x59   : > { %689 = vmatpush.bf16.msrb.mxu2 %v1024_v60  ;;  %v209_v41 = vrot.slane %v208_v35, 4  ;;  %v216_v42 = vrot.slane %v215_v36, 4  ;;  %v192_v43 = vrot.slane %v191_v30, 1  ;;  %v199_v44 = vrot.slane %v198_v31, 1  ;;  %v989_v59 = vld [vmem:[#allocation2 + $0x128] sm:$0xf0] }
  0x5a   : > { %702 = vmatpush.bf16.msrb.mxu3 %v1088_v63  ;;  %v1155_v60 = vld [vmem:[#allocation2 + $0x1a4] sm:$0xf]  ;;  %v1053_v1 = vld [vmem:[#allocation2 + $0x1a8] sm:$0xf0]  ;;  %v928_v3 = vor.u32 %v1123_v54, %v925_v55  ;;  %v853_v9 = vld [vmem:[#allocation2 + $0x18] sm:$0xf0] }
  0x5b   : > { %664 = vmatpush.bf16.msrb.mxu0 %v888_v7  ;;  %v210_v49 = vmax.f32 %v208_v35, %v209_v41  ;;  %v217_v50 = vmax.f32 %v215_v36, %v216_v42  ;;  %v193_v51 = vadd.f32 %v192_v43, %v191_v30  ;;  %v200_v52 = vadd.f32 %v199_v44, %v198_v31  ;;  %v1121_v12 = vld [vmem:[#allocation2 + $0x94] sm:$0xf]  ;;  %v917_v13 = vld [vmem:[#allocation2 + $0x98] sm:$0xf0]  ;;  %v1103_v23 = vld [vmem:[#allocation2 + $0x4] sm:$0xf] }
  0x5c   : > { %677 = vmatpush.bf16.msrb.mxu1 %v952_v8  ;;  %v1105_v8 = vld [vmem:[#allocation2 + $0x14] sm:$0xf]  ;;  %v1056_v11 = vor.u32 %v1155_v60, %v1053_v1  ;;  %v981_v17 = vld [vmem:[#allocation2 + $0x118] sm:$0xf0]  ;;  %v920_v25 = vor.u32 %v1121_v12, %v917_v13  ;;  %v1119_v27 = vld [vmem:[#allocation2 + $0x84] sm:$0xf] }
  0x5d   : > { %690 = vmatpush.bf16.msrb.mxu2 %v1016_v10  ;;  %v211_v61 = vrot.slane %v210_v49, 2  ;;  %v218_v62 = vrot.slane %v217_v50, 2  ;;  %v201_v63 = vmul.f32 0.25, %v193_v51  ;;  %v202_v0 = vmul.f32 0.25, %v200_v52  ;;  %v1153_v19 = vld [vmem:[#allocation2 + $0x194] sm:$0xf] }
  0x5e   : > { %703 = vmatpush.bf16.msrb.mxu3 %v1080_v16  ;;  %v992_v10 = vor.u32 %v1139_v58, %v989_v59  ;;  %v1137_v16 = vld [vmem:[#allocation2 + $0x114] sm:$0xf]  ;;  %v856_v18 = vor.u32 %v1105_v8, %v853_v9  ;;  %v1045_v20 = vld [vmem:[#allocation2 + $0x198] sm:$0xf0]  ;;  %v909_v31 = vld [vmem:[#allocation2 + $0x88] sm:$0xf0] }
  0x5f   : > { %665 = vmatpush.bf16.msrb.mxu0 %v880_v24  ;;  %v212_v4 = vmax.f32 %v210_v49, %v211_v61  ;;  %v219_v5 = vmax.f32 %v217_v50, %v218_v62  ;;  %v222_v6 = vpack.c.bf16 %v201_v63, %v201_v63  ;;  %v223_v7 = vpack.c.bf16 %v202_v0, %v202_v0  ;;  %v845_v24 = vld [vmem:[#allocation2 + $0x8] sm:$0xf0]  ;;  %v1151_v36 = vld [vmem:[#allocation2 + $0x184] sm:$0xf]  ;;  %s178_s13 = scalar_lea.vmem [#allocation7], %s839_s4  ;;  %s747_s15 = sshll.u32 %s743_s8, 4  ;;  %s748_s15 = int_to_ptr.hbm [resolvable:$true] %s747_s15 }
  0x60   : > { %678 = vmatpush.bf16.msrb.mxu1 %v944_v33  ;;  %v984_v26 = vor.u32 %v1137_v16, %v981_v17  ;;  %v1048_v30 = vor.u32 %v1153_v19, %v1045_v20  ;;  %v1135_v33 = vld [vmem:[#allocation2 + $0x104] sm:$0xf]  ;;  %v973_v34 = vld [vmem:[#allocation2 + $0x108] sm:$0xf0]  ;;  %v848_v35 = vor.u32 %v1103_v23, %v845_v24  ;;  %s745_s14 = sshll.u32 %s178_s13, 4  ;;  %s732_s16 = scalar_lea.sflag [#allocation4], %s1476_s29  ;;  %s746_s14 = int_to_ptr.vmem [resolvable:$true] %s745_s14 }
  0x61   : > { %691 = vmatpush.bf16.msrb.mxu2 %v1008_v37  ;;  %v213_v14 = vrot.slane %v212_v4, 1  ;;  %v220_v15 = vrot.slane %v219_v5, 1  ;;  %618 = vmatmul.bf16.vlgmr.msra.gmra.mxu0 %v222_v6  ;;  %v1037_v37 = vld [vmem:[#allocation2 + $0x188] sm:$0xf0]  ;;  %v976_v39 = vor.u32 %v1135_v33, %v973_v34  ;;  %s1305_s18 = sshra.s32 %s748_s15, 4  ;;  %s1311_s22 = scalar_lea.hbm %s1536_s2, 16  ;;  %s1306_s18 = int_to_ptr.hbm [resolvable:$true] %s1305_s18 }
  0x62   : > { %704 = vmatpush.bf16.msrb.mxu3 %v1072_v38  ;;  %631 = vmatmul.bf16.vlgmr.msra.gmra.mxu1 %v223_v7  ;;  %v912_v38 = vor.u32 %v1119_v27, %v909_v31  ;;  %v1040_v40 = vor.u32 %v1151_v36, %v1037_v37  ;;  %s1307_s19 = scalar_lea.hbm %s1306_s18, 8  ;;  %p1312_p12 = scmp.lt.s32.totalorder %s1306_s18, %s1536_s2 }
  0x63   : > { %666 = vmatpush.bf16.msrb.mxu0 %v872_v46  ;;  %v214_v21 = vmax.f32 %v212_v4, %v213_v14  ;;  %v221_v22 = vmax.f32 %v219_v5, %v220_v15  ;;  %p1308_p1 = scmp.ne.s32.totalorder %s1306_s18, %s1307_s19  ;;  %p1313_p8 = scmp.lt.s32.totalorder %s1311_s22, %s1307_s19 }
  0x64   : > { %679 = vmatpush.bf16.msrb.mxu1 %v936_v47 }
  0x65   : > { %692 = vmatpush.bf16.msrb.mxu2 %v1000_v56  ;;  %v224_v28 = vpack.c.bf16 %v214_v21, %v214_v21  ;;  %v225_v29 = vpack.c.bf16 %v221_v22, %v221_v22  ;;  %p1309_p3 = pnand %p1308_p1, %p1441_p13  ;;  %p1314_p7 = por %p1313_p8, %p1312_p12 }
  0x66   : > { %705 = vmatpush.bf16.msrb.mxu3 %v1064_v57 }
  0x67   : > { %667 = vmatpush.bf16.msrb.mxu0 %v864_v2  ;;  %644 = vmatmul.bf16.vlgmr.msra.gmra.mxu2 %v224_v28  ;;  %p1310_p5 = pneg %p1309_p3 }
  0x68   : > { %680 = vmatpush.bf16.msrb.mxu1 %v928_v3  ;;  %657 = vmatmul.bf16.vlgmr.msra.gmra.mxu3 %v225_v29 }
  0x69   : > { %693 = vmatpush.bf16.msrb.mxu2 %v992_v10  ;;  %p1315_p9 = pnand %p1314_p7, %p1310_p5 }
  0x6a   : > { %706 = vmatpush.bf16.msrb.mxu3 %v1056_v11 }
  0x6b   : > { %668 = vmatpush.bf16.msrb.mxu0 %v856_v18 }
  0x6c   : > { %681 = vmatpush.bf16.msrb.mxu1 %v920_v25 }
  0x6d   : > { %694 = vmatpush.bf16.msrb.mxu2 %v984_v26 }
  0x6e   : > { %707 = vmatpush.bf16.msrb.mxu3 %v1048_v30 }
  0x6f   : > { %669 = vmatpush.bf16.msrb.mxu0 %v848_v35 }
  0x70   : > { %682 = vmatpush.bf16.msrb.mxu1 %v912_v38 }
  0x71   : > { %695 = vmatpush.bf16.msrb.mxu2 %v976_v39 }
  0x72   : > { %708 = vmatpush.bf16.msrb.mxu3 %v1040_v40  ;;  %670 = vmatmul.bf16.vlgmr.msrb.gmra.mxu0 %v222_v6 }
  0x73   : > { %683 = vmatmul.bf16.vlgmr.msrb.gmra.mxu1 %v223_v7 }
  0x77   : > { %696 = vmatmul.bf16.vlgmr.msrb.gmra.mxu2 %v224_v28 }
  0x78   : > { %709 = vmatmul.bf16.vlgmr.msrb.gmra.mxu3 %v225_v29 }
  0xde   : > { %v619_v41 = vpop.f32.mrf.mxu0 }
  0xdf   : > { %v632_v42 = vpop.f32.mrf.mxu1 }
  0xe0   : > { %v633_v47 = vadd.f32 %v632_v42, %v619_v41 }
  0xe6   : > { %v621_v43 = vpop.f32.mrf.mxu0 }
  0xe7   : > { %v634_v44 = vpop.f32.mrf.mxu1 }
  0xea   : > { %v645_v45 = vpop.f32.mrf.mxu2 }
  0xeb   : > { %v658_v46 = vpop.f32.mrf.mxu3  ;;  %v646_v50 = vadd.f32 %v645_v45, %v633_v47 }
  0xed   : > { %v659_v53 = vadd.f32 %v658_v46, %v646_v50 }
  0xef   : > { %v671_v48 = vpop.f32.mrf.mxu0  ;;  %v714_v57 = vmul.f32 0.5, %v659_v53 }
  0xf0   : > { %v684_v49 = vpop.f32.mrf.mxu1 }
  0xf1   : > { %v685_v56 = vadd.f32 %v684_v49, %v671_v48  ;;  %1227 = vtanh.f32 %v714_v57 }
  0xf2   : > { %v647_v51 = vpop.f32.mrf.mxu2 }
  0xf3   : > { %v660_v52 = vpop.f32.mrf.mxu3 }
  0xf7   : > { %v673_v54 = vpop.f32.mrf.mxu0  ;;  %v1228_v1 = vpop.eup %1227 }
  0xf8   : > { %v686_v55 = vpop.f32.mrf.mxu1  ;;  %v718_v2 = vmul.f32 0.5, %v1228_v1 }
  0xfa   : > { %v697_v58 = vpop.f32.mrf.mxu2  ;;  %v720_v5 = vadd.f32 0.5, %v718_v2 }
  0xfb   : > { %v710_v59 = vpop.f32.mrf.mxu3  ;;  %v698_v60 = vadd.f32 %v697_v58, %v685_v56 }
  0xfc   : > { %v722_v8 = vperm.slane %v720_v5, 0 }
  0xfd   : > { %v711_v61 = vadd.f32 %v710_v59, %v698_v60 }
  0xff   : > { %v715_v62 = vmul.f32 0.5, %v711_v61 }
 0x101   : > { %1229 = vtanh.f32 %v715_v62 }
 0x102   : > { %v699_v63 = vpop.f32.mrf.mxu2 }
 0x103   : > { %v712_v0 = vpop.f32.mrf.mxu3 }
 0x107   : > { %v1230_v3 = vpop.eup %1229 }
 0x108   : > { %v719_v4 = vmul.f32 0.5, %v1230_v3 }
 0x10a   : > { %v721_v6 = vadd.f32 0.5, %v719_v4 }
 0x10c   : > { %v723_v7 = vperm.slane %v721_v6, 0 }
 0x10e   : > { %v726_v9 = vrot.slane %v723_v7, 4 }
 0x110   : > { %v727_v10 = vsel %vm186_vm0, %v722_v8, %v726_v9 }
 0x111   : > { %v729_v11 = vmul.f32 %v727_v10, %v1489_v32 }
 0x113   : > { %730 = vst [vmem:[%s178_s13] sm:$0xff] %v729_v11 }
 0x114   : > { %1318 = shalt.err (!%p1315_p9)
}
 0x115   : > { %1174 = dma.vmem_to_hbm [thread:$0]  (%p1441_p13), %s746_s14, 128, %s748_s15, %s732_s16  }
 0x116 PF: > { %s759_s3 = sand.u32 1, %s1349_s9   ;;  %p1542_p10 = scmp.ge.s32.totalorder %s1361_s12, 2 }
 0x117   : > { %s760_s29 = scalar_lea.sflag [#allocation4], %s759_s3 }
 0x118   : > { %p1185_p11 = pnand %p1542_p10, %p1446_p4 }
 0x11a   : > { %p1186_p0 = pneg %p1185_p11 }
 0x11c   : > { %1344 = dma.done.wait (%p1186_p0), %s760_s29, 128  }
 0x11d   : > { %1346 = vsyncadd (%p1186_p0), %s760_s29, 4294967168  ;;  %p16_p2 = scmp.ge.s32.totalorder %s1421_s23, 4   ;;  %s1543_s9 = smov %s1353_s10 }
 0x11e   : > { %s1544_s10 = smov %s1357_s11  ;;  %s1545_s11 = smov %s1433_s26 }
 0x11f   : > { %s1546_s12 = smov %s1421_s23  ;;  %18 = sbr.rel (!%p16_p2) target bundleno = 6 (0x6), region = 78 }
 0x124   :  { %766 = vsyncpa [#allocation3], 1 }
 0x125   :  { %768 = vsyncpa [#allocation3 + $0x1], 1 }
 0x126   :  { %769 = vsyncpa [#allocation6], 1 }
 0x127   :  { %771 = vsyncpa [#allocation6 + $0x1], 1 }
 0x128   :  { %772 = vsyncpa [#allocation4], 1 }
 0x129   :  { %774 = vsyncpa [#allocation4 + $0x1], 1 }

</bundles_post_ra>
